<compile_context>
chip_gen: v6e
topology: v6e:2x2x1
jax: 0.10.0
libtpu: 0.0.40
codegen_flags: <defaults>
</compile_context>

<pallas_src>
import functools
import math

import jax
import jax.numpy as jnp
from jax.experimental import pallas as pl
from jax.experimental.pallas import tpu as pltpu


_NONLIN = {
    "Tanh": jnp.tanh,
    "ReLU": lambda v: jnp.maximum(v, 0.0),
}


def _round_up(n, m):
    return ((n + m - 1) // m) * m


def _vmem_limit_bytes():
    """~75% of per-TC VMEM (v5e/v6e: 128 MiB -> 96 MiB, v7x: 64 MiB -> 48 MiB)."""
    try:
        cap = int(pltpu.get_tpu_info().vmem_capacity_bytes)
        return max(32 * 1024 * 1024, (cap * 3) // 4)
    except Exception:
        return 48 * 1024 * 1024  # conservative: safe on every generation


def _resident_spec(shape, index_map):
    """BlockSpec for a constant-index (revisited) weight block.

    Buffered(1): the block is resident, not streamed, so the default
    double-buffering would waste a full extra copy of the weights in VMEM.
    """
    try:
        return pl.BlockSpec(shape, index_map, pipeline_mode=pl.Buffered(1))
    except (TypeError, AttributeError):  # older JAX without pipeline_mode
        return pl.BlockSpec(shape, index_map)


# ---------------------------------------------------------------------------
# mode='forward': fused input projection + sequential recurrence.
#     xp_t  = x_t @ W_in.T                       (batched over the T block)
#     h_s   = act_{s-1} @ W_h.T + xp_s           (act_{-1} == 0 => h_0 == xp_0)
#     act_s = nonlin(h_s)
# T timesteps per grid step amortize the ~0.35us per-grid-step overhead; the
# activation (not h) is carried so the nonlinearity runs once per timestep.
# Grid = (batch_blocks [parallel], seq_blocks [arbitrary]).
# ---------------------------------------------------------------------------
def _rnn_forward_kernel(x_ref, win_t_ref, wh_t_ref, pred_ref, act_ref,
                        xp_scratch, act_carry, *, nonlin, T, unroll):
    @pl.when(pl.program_id(1) == 0)
    def _():
        # Zero activation carry: the s==0 recurrent term vanishes, so
        # h_0 = x_0 @ W_in.T with no branch inside the timestep loop.
        act_carry[...] = jnp.zeros_like(act_carry)

    win_t = win_t_ref[...]
    wh_t = wh_t_ref[...]

    # Fused input projection for the whole (T, TB) block: one big MXU matmul
    # staged into VMEM scratch (no HBM round trip of xp).
    T_, TB, I_pad = x_ref.shape
    H_pad = wh_t_ref.shape[1]
    xp_scratch[...] = jnp.dot(
        x_ref[...].reshape(T_ * TB, I_pad), win_t,
        preferred_element_type=jnp.float32).reshape(T_, TB, H_pad)

    def step(t, act):
        h = (jnp.dot(act.astype(wh_t.dtype), wh_t,
                     preferred_element_type=jnp.float32)
             + xp_scratch[t])
        a = nonlin(h)
        pred_ref[t] = h.astype(pred_ref.dtype)
        act_ref[t] = a.astype(act_ref.dtype)
        return a

    act_carry[...] = jax.lax.fori_loop(0, T, step, act_carry[...],
                                       unroll=unroll)


# ---------------------------------------------------------------------------
# mode='inference': no recurrence through h, so the whole layer is ONE fused
# matmul over all S*B rows (fully parallel 2-D grid, N-tiled):
#     pred = [x | nonlin(shift(believes))] @ [W_in.T ; W_h.T]
# shift(believes)[0] == 0, and the zero rows are built in the wrapper, so s==0
# needs no special casing.
# ---------------------------------------------------------------------------
def _fused_proj_kernel(xa_ref, w_ref, pred_ref, act_ref, *, nonlin):
    h = jnp.dot(xa_ref[...], w_ref[...], preferred_element_type=jnp.float32)
    pred_ref[...] = h.astype(pred_ref.dtype)
    act_ref[...] = nonlin(h).astype(act_ref.dtype)


def rnn_layer_for_pc(x, w_in, w_h, *, nonlinearity="Tanh", believes=None,
                     mode="forward", timesteps_per_block=32,
                     compute_dtype=jnp.bfloat16):
    """Pallas implementation of RNNLayerForPC.forward (isSaS=False).

    x: [S, B, I], w_in: [H, I], w_h: [H, H].  Returns
    (prediction, nonlin(prediction)), each [S, B, H] float32.
    compute_dtype=jnp.bfloat16 (default) uses the fast MXU path with f32
    accumulation; pass jnp.float32 for exact reference parity.
    """
    S, B, I = x.shape
    H = w_in.shape[0]
    nonlin = _NONLIN[nonlinearity]
    cbytes = jnp.dtype(compute_dtype).itemsize

    vmem_limit = _vmem_limit_bytes()

    # Lane-dense, (8,128)-aligned padded sizes.
    B_pad = _round_up(B, 8)
    H_pad = _round_up(H, 128)
    I_pad = _round_up(I, 128)

    # Pre-transpose + zero-pad the weights once (MXU-friendly [K, N] layout;
    # no per-step on-chip transpose).
    win_t = jnp.zeros((I_pad, H_pad), compute_dtype).at[:I, :H].set(
        w_in.T.astype(compute_dtype))
    wh_t = jnp.zeros((H_pad, H_pad), compute_dtype).at[:H, :H].set(
        w_h.T.astype(compute_dtype))

    # Lane-dense padded input slab.
    x_p = jnp.zeros((S, B_pad, I_pad), compute_dtype).at[:, :B, :I].set(
        x.astype(compute_dtype))

    if mode == "forward":
        # Batch-block axis: batch rows are independent through the recurrence,
        # so v7x's two TensorCores each take half the batch.
        if B_pad >= 16 and B_pad % 16 == 0:
            TB = B_pad // 2
        else:
            TB = B_pad
        grid_b = B_pad // TB

        def fwd_vmem(t):
            return (2 * t * TB * I_pad * cbytes                 # x (double buf)
                    + 2 * 2 * t * TB * H_pad * 4                # pred+act outs
                    + (I_pad * H_pad + H_pad * H_pad) * cbytes  # resident W
                    + t * TB * H_pad * 4                        # xp scratch
                    + TB * H_pad * 4)                           # act carry

        T = max(1, min(timesteps_per_block, S))
        while T > 1 and fwd_vmem(T) > (vmem_limit * 7) // 10:
            T //= 2
        # Prefer a T that divides S so no wasted tail recurrence work.
        for t in range(T, 0, -1):
            if S % t == 0:
                if 2 * t >= T:
                    T = t
                break
        S_pad = _round_up(S, T)
        if S_pad != S:
            x_p = jnp.zeros((S_pad, B_pad, I_pad), compute_dtype).at[:S].set(x_p)

        # Cap unroll for large H: full unroll of dependent steps at big H_pad
        # pressures regalloc into VMEM spills.
        unroll = min(T, 8) if H_pad <= 1024 else min(T, 2)

        kernel = functools.partial(_rnn_forward_kernel, nonlin=nonlin, T=T,
                                   unroll=unroll)
        io_blk = pl.BlockSpec((T, TB, H_pad), lambda b, s: (s, b, 0))

        flops = (2 * S_pad * B_pad * I_pad * H_pad
                 + 2 * S_pad * B_pad * H_pad * H_pad)
        transc = S_pad * B_pad * H_pad if nonlinearity == "Tanh" else 0
        bytes_acc = (S_pad * B_pad * I_pad * cbytes
                     + (I_pad * H_pad + H_pad * H_pad) * cbytes
                     + 2 * S_pad * B_pad * H_pad * 4)

        pred_p, act_p = pl.pallas_call(
            kernel,
            out_shape=(jax.ShapeDtypeStruct((S_pad, B_pad, H_pad), jnp.float32),
                       jax.ShapeDtypeStruct((S_pad, B_pad, H_pad), jnp.float32)),
            grid_spec=pltpu.PrefetchScalarGridSpec(
                num_scalar_prefetch=0,
                grid=(grid_b, S_pad // T),
                in_specs=[pl.BlockSpec((T, TB, I_pad), lambda b, s: (s, b, 0)),
                          _resident_spec((I_pad, H_pad), lambda b, s: (0, 0)),
                          _resident_spec((H_pad, H_pad), lambda b, s: (0, 0))],
                out_specs=[io_blk, io_blk],
                scratch_shapes=[pltpu.VMEM((T, TB, H_pad), jnp.float32),
                                pltpu.VMEM((TB, H_pad), jnp.float32)]),
            compiler_params=pltpu.CompilerParams(
                dimension_semantics=("parallel", "arbitrary"),
                vmem_limit_bytes=vmem_limit),
            cost_estimate=pl.CostEstimate(flops=flops, transcendentals=transc,
                                          bytes_accessed=bytes_acc),
        )(x_p, win_t, wh_t)
        return pred_p[:S, :B, :H], act_p[:S, :B, :H]

    elif mode == "inference":
        assert believes is not None and believes.shape == (S, B, H)
        # shift(believes): a[0] = 0, a[s] = nonlin(believes[s-1]).  Nonlin is
        # applied in the wrapper so the zero/padded rows stay exactly zero.
        a_p = jnp.zeros((S, B_pad, H_pad), compute_dtype)
        if S > 1:
            a_p = a_p.at[1:, :B, :H].set(
                nonlin(believes[:-1].astype(jnp.float32)).astype(compute_dtype))

        # Single fused matmul: [x | a] @ [W_in.T ; W_h.T].
        K_pad = I_pad + H_pad
        M = S * B_pad
        xa = jnp.concatenate([x_p, a_p], axis=-1).reshape(M, K_pad)
        w_cat = jnp.concatenate([win_t, wh_t], axis=0)  # (K_pad, H_pad)

        TM = 512 if vmem_limit >= 64 * 1024 * 1024 else 256
        TM = min(TM, _round_up(M, 8))
        M_pad = _round_up(M, TM)
        if M_pad != M:
            xa = jnp.zeros((M_pad, K_pad), compute_dtype).at[:M].set(xa)
        grid_m = M_pad // TM

        # N-tile H_pad so per-block VMEM stays bounded for large H and the
        # extra parallel axis gives v7x's two TCs work when grid_m is small.
        if H_pad <= 512:
            TN = H_pad
        else:
            TN = max(t for t in (512, 384, 256, 128) if H_pad % t == 0)
        grid_n = H_pad // TN

        if grid_n == 1:
            w_spec = _resident_spec((K_pad, TN), lambda i, j: (0, 0))
        else:
            w_spec = pl.BlockSpec((K_pad, TN), lambda i, j: (0, j))
        out_blk = pl.BlockSpec((TM, TN), lambda i, j: (i, j))

        kernel = functools.partial(_fused_proj_kernel, nonlin=nonlin)

        flops = 2 * M_pad * K_pad * H_pad
        transc = M_pad * H_pad if nonlinearity == "Tanh" else 0
        bytes_acc = (M_pad * K_pad * cbytes + K_pad * H_pad * cbytes
                     + 2 * M_pad * H_pad * 4)

        pred_flat, act_flat = pl.pallas_call(
            kernel,
            out_shape=(jax.ShapeDtypeStruct((M_pad, H_pad), jnp.float32),
                       jax.ShapeDtypeStruct((M_pad, H_pad), jnp.float32)),
            grid_spec=pltpu.PrefetchScalarGridSpec(
                num_scalar_prefetch=0,
                grid=(grid_m, grid_n),
                in_specs=[pl.BlockSpec((TM, K_pad), lambda i, j: (i, 0)),
                          w_spec],
                out_specs=[out_blk, out_blk]),
            compiler_params=pltpu.CompilerParams(
                dimension_semantics=("parallel", "parallel"),
                vmem_limit_bytes=vmem_limit),
            cost_estimate=pl.CostEstimate(flops=flops, transcendentals=transc,
                                          bytes_accessed=bytes_acc),
        )(xa, w_cat)
        pred = pred_flat[:M].reshape(S, B_pad, H_pad)[:, :B, :H]
        act = act_flat[:M].reshape(S, B_pad, H_pad)[:, :B, :H]
        return pred, act

    else:
        raise ValueError(f"unknown mode {mode}")


# ---------------------------------------------------------------------------
# Plain-JAX reference (mirrors the PyTorch forward) for verification.
# ---------------------------------------------------------------------------
def _ref_rnn_layer_for_pc(x, w_in, w_h, *, nonlinearity="Tanh",
                          believes=None, mode="forward"):
    nonlin = _NONLIN[nonlinearity]
    S = x.shape[0]
    xp = jnp.einsum("sbi,hi->sbh", x, w_in)
    preds = []
    h = None
    for s in range(S):
        if s == 0:
            h = xp[0]
        elif mode == "forward":
            h = nonlin(h) @ w_h.T + xp[s]
        else:
            h = nonlin(believes[s - 1]) @ w_h.T + xp[s]
        preds.append(h)
    pred = jnp.stack(preds, axis=0)
    return pred, nonlin(pred)


if __name__ == "__main__":
    S, B, I, H = 8, 4, 16, 32   # sequence, batch, input size, hidden size

    key = jax.random.PRNGKey(0)
    k_x, k_win, k_wh, k_bel = jax.random.split(key, 4)

    # nn.Linear default init: U(-1/sqrt(fan_in), 1/sqrt(fan_in)), bias=False.
    bound_in = 1.0 / math.sqrt(I)
    bound_h = 1.0 / math.sqrt(H)
    w_in = jax.random.uniform(k_win, (H, I), jnp.float32, -bound_in, bound_in)
    w_h = jax.random.uniform(k_wh, (H, H), jnp.float32, -bound_h, bound_h)

    x = jax.random.normal(k_x, (S, B, I), jnp.float32)
    believes = jax.random.normal(k_bel, (S, B, H), jnp.float32)

    pred_f_ref, act_f_ref = _ref_rnn_layer_for_pc(
        x, w_in, w_h, nonlinearity="Tanh", mode="forward")
    pred_i_ref, act_i_ref = _ref_rnn_layer_for_pc(
        x, w_in, w_h, nonlinearity="Tanh", believes=believes, mode="inference")

    # --- f32 path: exact reference parity -------------------------------
    pred_f, act_f = rnn_layer_for_pc(x, w_in, w_h, nonlinearity="Tanh",
                                     mode="forward",
                                     compute_dtype=jnp.float32)
    jax.block_until_ready((pred_f, act_f))
    assert jnp.allclose(pred_f, pred_f_ref, atol=1e-4, rtol=1e-4)
    assert jnp.allclose(act_f, act_f_ref, atol=1e-4, rtol=1e-4)

    pred_i, act_i = rnn_layer_for_pc(x, w_in, w_h, nonlinearity="Tanh",
                                     believes=believes, mode="inference",
                                     compute_dtype=jnp.float32)
    jax.block_until_ready((pred_i, act_i))
    assert jnp.allclose(pred_i, pred_i_ref, atol=1e-4, rtol=1e-4)
    assert jnp.allclose(act_i, act_i_ref, atol=1e-4, rtol=1e-4)

    # --- bf16 fast path (default): loose tolerance (rounding compounds
    #     along the recurrence) -------------------------------------------
    pred_fb, act_fb = rnn_layer_for_pc(x, w_in, w_h, nonlinearity="Tanh",
                                       mode="forward")
    jax.block_until_ready((pred_fb, act_fb))
    assert jnp.allclose(pred_fb, pred_f_ref, atol=5e-2, rtol=5e-2)
    assert jnp.allclose(act_fb, act_f_ref, atol=5e-2, rtol=5e-2)

    pred_ib, act_ib = rnn_layer_for_pc(x, w_in, w_h, nonlinearity="Tanh",
                                       believes=believes, mode="inference")
    jax.block_until_ready((pred_ib, act_ib))
    assert jnp.allclose(pred_ib, pred_i_ref, atol=5e-2, rtol=5e-2)
    assert jnp.allclose(act_ib, act_i_ref, atol=5e-2, rtol=5e-2)

    print("KERNEL_OK")
</pallas_src>

<mosaic_0001>
module attributes {stable_mosaic.version = 11 : i64} {
  func.func @_rnn_forward_kernel(%arg0: i32, %arg1: i32, %arg2: memref<8x8x128xf32, #tpu.memory_space<vmem>>, %arg3: memref<128x128xf32, #tpu.memory_space<vmem>>, %arg4: memref<128x128xf32, #tpu.memory_space<vmem>>, %arg5: memref<8x8x128xf32, #tpu.memory_space<vmem>>, %arg6: memref<8x8x128xf32, #tpu.memory_space<vmem>>, %arg7: memref<8x8x128xf32, #tpu.memory_space<vmem>>, %arg8: memref<8x128xf32, #tpu.memory_space<vmem>>) attributes {dimension_semantics = [#tpu.dimension_semantics<parallel>, #tpu.dimension_semantics<arbitrary>], iteration_bounds = array<i64: 1, 1>, scalar_prefetch = 0 : i64, scratch_operands = 2 : i64, tpu.core_type = #tpu.core_type<tc>, window_params = [{transform_indices = @transform_0, window_bounds = array<i64: 8, 8, 128>}, {pipeline_mode = #tpu.pipeline_mode<synchronous>, transform_indices = @transform_1, window_bounds = array<i64: 128, 128>}, {pipeline_mode = #tpu.pipeline_mode<synchronous>, transform_indices = @transform_2, window_bounds = array<i64: 128, 128>}, {transform_indices = @transform_3, window_bounds = array<i64: 8, 8, 128>}, {transform_indices = @transform_4, window_bounds = array<i64: 8, 8, 128>}]} {
    %c0_i32 = arith.constant 0 : i32
    %0 = arith.cmpi eq, %arg1, %c0_i32 : i32
    %1 = arith.extui %0 : i1 to i32
    %c0_i32_0 = arith.constant 0 : i32
    %2 = arith.cmpi ne, %1, %c0_i32_0 : i32
    scf.if %2 {
      %cst_71 = arith.constant 0.000000e+00 : f32
      %124 = vector.broadcast %cst_71 : f32 to vector<8x128xf32>
      %c0_72 = arith.constant 0 : index
      %c0_73 = arith.constant 0 : index
      %125 = vector.load %arg8[%c0_72, %c0_73] : memref<8x128xf32, #tpu.memory_space<vmem>>, vector<8x128xf32>
      tpu.vector_store %arg8[%c0_72, %c0_73], %124 {strides = array<i32>} : memref<8x128xf32, #tpu.memory_space<vmem>>, vector<8x128xf32>,
    } else {
    }
    %c0 = arith.constant 0 : index
    %c0_1 = arith.constant 0 : index
    %3 = vector.load %arg3[%c0, %c0_1] : memref<128x128xf32, #tpu.memory_space<vmem>>, vector<128x128xf32>
    %c0_2 = arith.constant 0 : index
    %c0_3 = arith.constant 0 : index
    %4 = vector.load %arg4[%c0_2, %c0_3] : memref<128x128xf32, #tpu.memory_space<vmem>>, vector<128x128xf32>
    %c0_4 = arith.constant 0 : index
    %c0_5 = arith.constant 0 : index
    %c0_6 = arith.constant 0 : index
    %5 = vector.load %arg2[%c0_4, %c0_5, %c0_6] : memref<8x8x128xf32, #tpu.memory_space<vmem>>, vector<8x8x128xf32>
    %6 = vector.shape_cast %5 : vector<8x8x128xf32> to vector<64x128xf32>
    %cst = arith.constant dense<0.000000e+00> : vector<64x128xf32>
    %7 = tpu.matmul %6, %3, %cst {dimension_numbers = #tpu.dot_dimension_numbers<[1], [0], [0], [1], [0, 0, 1, 1], [], []>} : vector<64x128xf32>, vector<128x128xf32>, vector<64x128xf32> -> vector<64x128xf32>
    %8 = vector.shape_cast %7 : vector<64x128xf32> to vector<8x8x128xf32>
    %c0_7 = arith.constant 0 : index
    %c0_8 = arith.constant 0 : index
    %c0_9 = arith.constant 0 : index
    %9 = vector.load %arg7[%c0_7, %c0_8, %c0_9] : memref<8x8x128xf32, #tpu.memory_space<vmem>>, vector<8x8x128xf32>
    tpu.vector_store %arg7[%c0_7, %c0_8, %c0_9], %8 {strides = array<i32>} : memref<8x8x128xf32, #tpu.memory_space<vmem>>, vector<8x8x128xf32>,
    %c0_10 = arith.constant 0 : index
    %c0_11 = arith.constant 0 : index
    %10 = vector.load %arg8[%c0_10, %c0_11] : memref<8x128xf32, #tpu.memory_space<vmem>>, vector<8x128xf32>
    %c0_i32_12 = arith.constant 0 : i32
    %cst_13 = arith.constant dense<0.000000e+00> : vector<8x128xf32>
    %11 = tpu.matmul %10, %4, %cst_13 {dimension_numbers = #tpu.dot_dimension_numbers<[1], [0], [0], [1], [0, 0, 1, 1], [], []>} : vector<8x128xf32>, vector<128x128xf32>, vector<8x128xf32> -> vector<8x128xf32>
    %12 = arith.index_cast %c0_i32_12 : i32 to index
    %c0_14 = arith.constant 0 : index
    %c0_15 = arith.constant 0 : index
    %13 = vector.load %arg7[%12, %c0_14, %c0_15] : memref<8x8x128xf32, #tpu.memory_space<vmem>>, vector<1x8x128xf32>
    %14 = vector.shape_cast %13 : vector<1x8x128xf32> to vector<8x128xf32>
    %15 = arith.addf %11, %14 : vector<8x128xf32>
    %16 = math.tanh %15 : vector<8x128xf32>
    %17 = arith.index_cast %c0_i32_12 : i32 to index
    %c0_16 = arith.constant 0 : index
    %c0_17 = arith.constant 0 : index
    %18 = vector.load %arg5[%17, %c0_16, %c0_17] : memref<8x8x128xf32, #tpu.memory_space<vmem>>, vector<1x8x128xf32>
    %19 = vector.shape_cast %18 : vector<1x8x128xf32> to vector<8x128xf32>
    %20 = vector.shape_cast %15 : vector<8x128xf32> to vector<1x8x128xf32>
    tpu.vector_store %arg5[%17, %c0_16, %c0_17], %20 {strides = array<i32>} : memref<8x8x128xf32, #tpu.memory_space<vmem>>, vector<1x8x128xf32>,
    %21 = arith.index_cast %c0_i32_12 : i32 to index
    %c0_18 = arith.constant 0 : index
    %c0_19 = arith.constant 0 : index
    %22 = vector.load %arg6[%21, %c0_18, %c0_19] : memref<8x8x128xf32, #tpu.memory_space<vmem>>, vector<1x8x128xf32>
    %23 = vector.shape_cast %22 : vector<1x8x128xf32> to vector<8x128xf32>
    %24 = vector.shape_cast %16 : vector<8x128xf32> to vector<1x8x128xf32>
    tpu.vector_store %arg6[%21, %c0_18, %c0_19], %24 {strides = array<i32>} : memref<8x8x128xf32, #tpu.memory_space<vmem>>, vector<1x8x128xf32>,
    %c1_i32 = arith.constant 1 : i32
    %cst_20 = arith.constant dense<0.000000e+00> : vector<8x128xf32>
    %25 = tpu.matmul %16, %4, %cst_20 {dimension_numbers = #tpu.dot_dimension_numbers<[1], [0], [0], [1], [0, 0, 1, 1], [], []>} : vector<8x128xf32>, vector<128x128xf32>, vector<8x128xf32> -> vector<8x128xf32>
    %26 = arith.index_cast %c1_i32 : i32 to index
    %c0_21 = arith.constant 0 : index
    %c0_22 = arith.constant 0 : index
    %27 = vector.load %arg7[%26, %c0_21, %c0_22] : memref<8x8x128xf32, #tpu.memory_space<vmem>>, vector<1x8x128xf32>
    %28 = vector.shape_cast %27 : vector<1x8x128xf32> to vector<8x128xf32>
    %29 = arith.addf %25, %28 : vector<8x128xf32>
    %30 = math.tanh %29 : vector<8x128xf32>
    %31 = arith.index_cast %c1_i32 : i32 to index
    %c0_23 = arith.constant 0 : index
    %c0_24 = arith.constant 0 : index
    %32 = vector.load %arg5[%31, %c0_23, %c0_24] : memref<8x8x128xf32, #tpu.memory_space<vmem>>, vector<1x8x128xf32>
    %33 = vector.shape_cast %32 : vector<1x8x128xf32> to vector<8x128xf32>
    %34 = vector.shape_cast %29 : vector<8x128xf32> to vector<1x8x128xf32>
    tpu.vector_store %arg5[%31, %c0_23, %c0_24], %34 {strides = array<i32>} : memref<8x8x128xf32, #tpu.memory_space<vmem>>, vector<1x8x128xf32>,
    %35 = arith.index_cast %c1_i32 : i32 to index
    %c0_25 = arith.constant 0 : index
    %c0_26 = arith.constant 0 : index
    %36 = vector.load %arg6[%35, %c0_25, %c0_26] : memref<8x8x128xf32, #tpu.memory_space<vmem>>, vector<1x8x128xf32>
    %37 = vector.shape_cast %36 : vector<1x8x128xf32> to vector<8x128xf32>
    %38 = vector.shape_cast %30 : vector<8x128xf32> to vector<1x8x128xf32>
    tpu.vector_store %arg6[%35, %c0_25, %c0_26], %38 {strides = array<i32>} : memref<8x8x128xf32, #tpu.memory_space<vmem>>, vector<1x8x128xf32>,
    %c2_i32 = arith.constant 2 : i32
    %cst_27 = arith.constant dense<0.000000e+00> : vector<8x128xf32>
    %39 = tpu.matmul %30, %4, %cst_27 {dimension_numbers = #tpu.dot_dimension_numbers<[1], [0], [0], [1], [0, 0, 1, 1], [], []>} : vector<8x128xf32>, vector<128x128xf32>, vector<8x128xf32> -> vector<8x128xf32>
    %40 = arith.index_cast %c2_i32 : i32 to index
    %c0_28 = arith.constant 0 : index
    %c0_29 = arith.constant 0 : index
    %41 = vector.load %arg7[%40, %c0_28, %c0_29] : memref<8x8x128xf32, #tpu.memory_space<vmem>>, vector<1x8x128xf32>
    %42 = vector.shape_cast %41 : vector<1x8x128xf32> to vector<8x128xf32>
    %43 = arith.addf %39, %42 : vector<8x128xf32>
    %44 = math.tanh %43 : vector<8x128xf32>
    %45 = arith.index_cast %c2_i32 : i32 to index
    %c0_30 = arith.constant 0 : index
    %c0_31 = arith.constant 0 : index
    %46 = vector.load %arg5[%45, %c0_30, %c0_31] : memref<8x8x128xf32, #tpu.memory_space<vmem>>, vector<1x8x128xf32>
    %47 = vector.shape_cast %46 : vector<1x8x128xf32> to vector<8x128xf32>
    %48 = vector.shape_cast %43 : vector<8x128xf32> to vector<1x8x128xf32>
    tpu.vector_store %arg5[%45, %c0_30, %c0_31], %48 {strides = array<i32>} : memref<8x8x128xf32, #tpu.memory_space<vmem>>, vector<1x8x128xf32>,
    %49 = arith.index_cast %c2_i32 : i32 to index
    %c0_32 = arith.constant 0 : index
    %c0_33 = arith.constant 0 : index
    %50 = vector.load %arg6[%49, %c0_32, %c0_33] : memref<8x8x128xf32, #tpu.memory_space<vmem>>, vector<1x8x128xf32>
    %51 = vector.shape_cast %50 : vector<1x8x128xf32> to vector<8x128xf32>
    %52 = vector.shape_cast %44 : vector<8x128xf32> to vector<1x8x128xf32>
    tpu.vector_store %arg6[%49, %c0_32, %c0_33], %52 {strides = array<i32>} : memref<8x8x128xf32, #tpu.memory_space<vmem>>, vector<1x8x128xf32>,
    %c3_i32 = arith.constant 3 : i32
    %cst_34 = arith.constant dense<0.000000e+00> : vector<8x128xf32>
    %53 = tpu.matmul %44, %4, %cst_34 {dimension_numbers = #tpu.dot_dimension_numbers<[1], [0], [0], [1], [0, 0, 1, 1], [], []>} : vector<8x128xf32>, vector<128x128xf32>, vector<8x128xf32> -> vector<8x128xf32>
    %54 = arith.index_cast %c3_i32 : i32 to index
    %c0_35 = arith.constant 0 : index
    %c0_36 = arith.constant 0 : index
    %55 = vector.load %arg7[%54, %c0_35, %c0_36] : memref<8x8x128xf32, #tpu.memory_space<vmem>>, vector<1x8x128xf32>
    %56 = vector.shape_cast %55 : vector<1x8x128xf32> to vector<8x128xf32>
    %57 = arith.addf %53, %56 : vector<8x128xf32>
    %58 = math.tanh %57 : vector<8x128xf32>
    %59 = arith.index_cast %c3_i32 : i32 to index
    %c0_37 = arith.constant 0 : index
    %c0_38 = arith.constant 0 : index
    %60 = vector.load %arg5[%59, %c0_37, %c0_38] : memref<8x8x128xf32, #tpu.memory_space<vmem>>, vector<1x8x128xf32>
    %61 = vector.shape_cast %60 : vector<1x8x128xf32> to vector<8x128xf32>
    %62 = vector.shape_cast %57 : vector<8x128xf32> to vector<1x8x128xf32>
    tpu.vector_store %arg5[%59, %c0_37, %c0_38], %62 {strides = array<i32>} : memref<8x8x128xf32, #tpu.memory_space<vmem>>, vector<1x8x128xf32>,
    %63 = arith.index_cast %c3_i32 : i32 to index
    %c0_39 = arith.constant 0 : index
    %c0_40 = arith.constant 0 : index
    %64 = vector.load %arg6[%63, %c0_39, %c0_40] : memref<8x8x128xf32, #tpu.memory_space<vmem>>, vector<1x8x128xf32>
    %65 = vector.shape_cast %64 : vector<1x8x128xf32> to vector<8x128xf32>
    %66 = vector.shape_cast %58 : vector<8x128xf32> to vector<1x8x128xf32>
    tpu.vector_store %arg6[%63, %c0_39, %c0_40], %66 {strides = array<i32>} : memref<8x8x128xf32, #tpu.memory_space<vmem>>, vector<1x8x128xf32>,
    %c4_i32 = arith.constant 4 : i32
    %cst_41 = arith.constant dense<0.000000e+00> : vector<8x128xf32>
    %67 = tpu.matmul %58, %4, %cst_41 {dimension_numbers = #tpu.dot_dimension_numbers<[1], [0], [0], [1], [0, 0, 1, 1], [], []>} : vector<8x128xf32>, vector<128x128xf32>, vector<8x128xf32> -> vector<8x128xf32>
    %68 = arith.index_cast %c4_i32 : i32 to index
    %c0_42 = arith.constant 0 : index
    %c0_43 = arith.constant 0 : index
    %69 = vector.load %arg7[%68, %c0_42, %c0_43] : memref<8x8x128xf32, #tpu.memory_space<vmem>>, vector<1x8x128xf32>
    %70 = vector.shape_cast %69 : vector<1x8x128xf32> to vector<8x128xf32>
    %71 = arith.addf %67, %70 : vector<8x128xf32>
    %72 = math.tanh %71 : vector<8x128xf32>
    %73 = arith.index_cast %c4_i32 : i32 to index
    %c0_44 = arith.constant 0 : index
    %c0_45 = arith.constant 0 : index
    %74 = vector.load %arg5[%73, %c0_44, %c0_45] : memref<8x8x128xf32, #tpu.memory_space<vmem>>, vector<1x8x128xf32>
    %75 = vector.shape_cast %74 : vector<1x8x128xf32> to vector<8x128xf32>
    %76 = vector.shape_cast %71 : vector<8x128xf32> to vector<1x8x128xf32>
    tpu.vector_store %arg5[%73, %c0_44, %c0_45], %76 {strides = array<i32>} : memref<8x8x128xf32, #tpu.memory_space<vmem>>, vector<1x8x128xf32>,
    %77 = arith.index_cast %c4_i32 : i32 to index
    %c0_46 = arith.constant 0 : index
    %c0_47 = arith.constant 0 : index
    %78 = vector.load %arg6[%77, %c0_46, %c0_47] : memref<8x8x128xf32, #tpu.memory_space<vmem>>, vector<1x8x128xf32>
    %79 = vector.shape_cast %78 : vector<1x8x128xf32> to vector<8x128xf32>
    %80 = vector.shape_cast %72 : vector<8x128xf32> to vector<1x8x128xf32>
    tpu.vector_store %arg6[%77, %c0_46, %c0_47], %80 {strides = array<i32>} : memref<8x8x128xf32, #tpu.memory_space<vmem>>, vector<1x8x128xf32>,
    %c5_i32 = arith.constant 5 : i32
    %cst_48 = arith.constant dense<0.000000e+00> : vector<8x128xf32>
    %81 = tpu.matmul %72, %4, %cst_48 {dimension_numbers = #tpu.dot_dimension_numbers<[1], [0], [0], [1], [0, 0, 1, 1], [], []>} : vector<8x128xf32>, vector<128x128xf32>, vector<8x128xf32> -> vector<8x128xf32>
    %82 = arith.index_cast %c5_i32 : i32 to index
    %c0_49 = arith.constant 0 : index
    %c0_50 = arith.constant 0 : index
    %83 = vector.load %arg7[%82, %c0_49, %c0_50] : memref<8x8x128xf32, #tpu.memory_space<vmem>>, vector<1x8x128xf32>
    %84 = vector.shape_cast %83 : vector<1x8x128xf32> to vector<8x128xf32>
    %85 = arith.addf %81, %84 : vector<8x128xf32>
    %86 = math.tanh %85 : vector<8x128xf32>
    %87 = arith.index_cast %c5_i32 : i32 to index
    %c0_51 = arith.constant 0 : index
    %c0_52 = arith.constant 0 : index
    %88 = vector.load %arg5[%87, %c0_51, %c0_52] : memref<8x8x128xf32, #tpu.memory_space<vmem>>, vector<1x8x128xf32>
    %89 = vector.shape_cast %88 : vector<1x8x128xf32> to vector<8x128xf32>
    %90 = vector.shape_cast %85 : vector<8x128xf32> to vector<1x8x128xf32>
    tpu.vector_store %arg5[%87, %c0_51, %c0_52], %90 {strides = array<i32>} : memref<8x8x128xf32, #tpu.memory_space<vmem>>, vector<1x8x128xf32>,
    %91 = arith.index_cast %c5_i32 : i32 to index
    %c0_53 = arith.constant 0 : index
    %c0_54 = arith.constant 0 : index
    %92 = vector.load %arg6[%91, %c0_53, %c0_54] : memref<8x8x128xf32, #tpu.memory_space<vmem>>, vector<1x8x128xf32>
    %93 = vector.shape_cast %92 : vector<1x8x128xf32> to vector<8x128xf32>
    %94 = vector.shape_cast %86 : vector<8x128xf32> to vector<1x8x128xf32>
    tpu.vector_store %arg6[%91, %c0_53, %c0_54], %94 {strides = array<i32>} : memref<8x8x128xf32, #tpu.memory_space<vmem>>, vector<1x8x128xf32>,
    %c6_i32 = arith.constant 6 : i32
    %cst_55 = arith.constant dense<0.000000e+00> : vector<8x128xf32>
    %95 = tpu.matmul %86, %4, %cst_55 {dimension_numbers = #tpu.dot_dimension_numbers<[1], [0], [0], [1], [0, 0, 1, 1], [], []>} : vector<8x128xf32>, vector<128x128xf32>, vector<8x128xf32> -> vector<8x128xf32>
    %96 = arith.index_cast %c6_i32 : i32 to index
    %c0_56 = arith.constant 0 : index
    %c0_57 = arith.constant 0 : index
    %97 = vector.load %arg7[%96, %c0_56, %c0_57] : memref<8x8x128xf32, #tpu.memory_space<vmem>>, vector<1x8x128xf32>
    %98 = vector.shape_cast %97 : vector<1x8x128xf32> to vector<8x128xf32>
    %99 = arith.addf %95, %98 : vector<8x128xf32>
    %100 = math.tanh %99 : vector<8x128xf32>
    %101 = arith.index_cast %c6_i32 : i32 to index
    %c0_58 = arith.constant 0 : index
    %c0_59 = arith.constant 0 : index
    %102 = vector.load %arg5[%101, %c0_58, %c0_59] : memref<8x8x128xf32, #tpu.memory_space<vmem>>, vector<1x8x128xf32>
    %103 = vector.shape_cast %102 : vector<1x8x128xf32> to vector<8x128xf32>
    %104 = vector.shape_cast %99 : vector<8x128xf32> to vector<1x8x128xf32>
    tpu.vector_store %arg5[%101, %c0_58, %c0_59], %104 {strides = array<i32>} : memref<8x8x128xf32, #tpu.memory_space<vmem>>, vector<1x8x128xf32>,
    %105 = arith.index_cast %c6_i32 : i32 to index
    %c0_60 = arith.constant 0 : index
    %c0_61 = arith.constant 0 : index
    %106 = vector.load %arg6[%105, %c0_60, %c0_61] : memref<8x8x128xf32, #tpu.memory_space<vmem>>, vector<1x8x128xf32>
    %107 = vector.shape_cast %106 : vector<1x8x128xf32> to vector<8x128xf32>
    %108 = vector.shape_cast %100 : vector<8x128xf32> to vector<1x8x128xf32>
    tpu.vector_store %arg6[%105, %c0_60, %c0_61], %108 {strides = array<i32>} : memref<8x8x128xf32, #tpu.memory_space<vmem>>, vector<1x8x128xf32>,
    %c7_i32 = arith.constant 7 : i32
    %cst_62 = arith.constant dense<0.000000e+00> : vector<8x128xf32>
    %109 = tpu.matmul %100, %4, %cst_62 {dimension_numbers = #tpu.dot_dimension_numbers<[1], [0], [0], [1], [0, 0, 1, 1], [], []>} : vector<8x128xf32>, vector<128x128xf32>, vector<8x128xf32> -> vector<8x128xf32>
    %110 = arith.index_cast %c7_i32 : i32 to index
    %c0_63 = arith.constant 0 : index
    %c0_64 = arith.constant 0 : index
    %111 = vector.load %arg7[%110, %c0_63, %c0_64] : memref<8x8x128xf32, #tpu.memory_space<vmem>>, vector<1x8x128xf32>
    %112 = vector.shape_cast %111 : vector<1x8x128xf32> to vector<8x128xf32>
    %113 = arith.addf %109, %112 : vector<8x128xf32>
    %114 = math.tanh %113 : vector<8x128xf32>
    %115 = arith.index_cast %c7_i32 : i32 to index
    %c0_65 = arith.constant 0 : index
    %c0_66 = arith.constant 0 : index
    %116 = vector.load %arg5[%115, %c0_65, %c0_66] : memref<8x8x128xf32, #tpu.memory_space<vmem>>, vector<1x8x128xf32>
    %117 = vector.shape_cast %116 : vector<1x8x128xf32> to vector<8x128xf32>
    %118 = vector.shape_cast %113 : vector<8x128xf32> to vector<1x8x128xf32>
    tpu.vector_store %arg5[%115, %c0_65, %c0_66], %118 {strides = array<i32>} : memref<8x8x128xf32, #tpu.memory_space<vmem>>, vector<1x8x128xf32>,
    %119 = arith.index_cast %c7_i32 : i32 to index
    %c0_67 = arith.constant 0 : index
    %c0_68 = arith.constant 0 : index
    %120 = vector.load %arg6[%119, %c0_67, %c0_68] : memref<8x8x128xf32, #tpu.memory_space<vmem>>, vector<1x8x128xf32>
    %121 = vector.shape_cast %120 : vector<1x8x128xf32> to vector<8x128xf32>
    %122 = vector.shape_cast %114 : vector<8x128xf32> to vector<1x8x128xf32>
    tpu.vector_store %arg6[%119, %c0_67, %c0_68], %122 {strides = array<i32>} : memref<8x8x128xf32, #tpu.memory_space<vmem>>, vector<1x8x128xf32>,
    %c8_i32 = arith.constant 8 : i32
    %c0_69 = arith.constant 0 : index
    %c0_70 = arith.constant 0 : index
    %123 = vector.load %arg8[%c0_69, %c0_70] : memref<8x128xf32, #tpu.memory_space<vmem>>, vector<8x128xf32>
    tpu.vector_store %arg8[%c0_69, %c0_70], %114 {strides = array<i32>} : memref<8x128xf32, #tpu.memory_space<vmem>>, vector<8x128xf32>,
    return
  }
  func.func @transform_0(%arg0: i32, %arg1: i32) -> (i32, i32, i32) {
    %c0_i32 = arith.constant 0 : i32
    %c0_i32_0 = arith.constant 0 : i32
    return %arg1, %arg0, %c0_i32 : i32, i32, i32
  }
  func.func @transform_1(%arg0: i32, %arg1: i32) -> (i32, i32) {
    %c0_i32 = arith.constant 0 : i32
    %c0_i32_0 = arith.constant 0 : i32
    %c0_i32_1 = arith.constant 0 : i32
    return %c0_i32, %c0_i32_0 : i32, i32
  }
  func.func @transform_2(%arg0: i32, %arg1: i32) -> (i32, i32) {
    %c0_i32 = arith.constant 0 : i32
    %c0_i32_0 = arith.constant 0 : i32
    %c0_i32_1 = arith.constant 0 : i32
    return %c0_i32, %c0_i32_0 : i32, i32
  }
  func.func @transform_3(%arg0: i32, %arg1: i32) -> (i32, i32, i32) {
    %c0_i32 = arith.constant 0 : i32
    %c0_i32_0 = arith.constant 0 : i32
    return %arg1, %arg0, %c0_i32 : i32, i32, i32
  }
  func.func @transform_4(%arg0: i32, %arg1: i32) -> (i32, i32, i32) {
    %c0_i32 = arith.constant 0 : i32
    %c0_i32_0 = arith.constant 0 : i32
    return %arg1, %arg0, %c0_i32 : i32, i32, i32
  }
}

</mosaic_0001>

<bundles_post_ra>
// kernel: tpu_custom_call.1
= control target key start
LH: loop header
LB: loop body
LE: loop exit
PB: predicated region body
PF: predicated region fallthrough
CT: control target
= control target key end

     0   :  { %10 = vsyncpa [#allocation5], 0  ;;  %s1867_s0 = inlined_call_operand.hbm [shape: f32[8,8,128], index: 0, kind: input, shape index: {}]   ;;  %s1868_s1 = inlined_call_operand.hbm [shape: f32[128,128], index: 1, kind: input, shape index: {}]   ;;  %s1869_s2 = inlined_call_operand.hbm [shape: f32[128,128], index: 2, kind: input, shape index: {}]   ;;  %s1870_s3 = inlined_call_operand.hbm [shape: f32[8,8,128], index: 3, kind: output, shape index: {0}]   ;;  %s1871_s4 = inlined_call_operand.hbm [shape: f32[8,8,128], index: 4, kind: output, shape index: {1}]  }
   0x1   :  { %11 = vsyncpa [#allocation8], 0 }
   0x2   :  { %12 = vsyncpa [#allocation6], 0 }
   0x3   :  { %13 = vsyncpa [#allocation12], 0  ;;  %s1483_s15 = smov [#allocation7]   ;;  %s1484_s17 = smov [#allocation4]  }
   0x4   :  { %s31_s16 = sshll.u32 %s1483_s15, 4  ;;  %s19_s18 = sshll.u32 %s1484_s17, 4  ;;  %s32_s16 = int_to_ptr.vmem [resolvable:$true] %s31_s16  ;;  %s20_s18 = int_to_ptr.vmem [resolvable:$true] %s19_s18 }
   0x5   :  { %s1383_s19 = scalar_lea.vmem %s32_s16, 2048  ;;  %p1388_p1 = scmp.lt.s32.totalorder %s32_s16, %s32_s16 }
   0x6   :  { %p1384_p0 = scmp.ne.s32.totalorder %s32_s16, %s1383_s19  ;;  %p1389_p2 = scmp.lt.s32.totalorder %s1383_s19, %s1383_s19 }
   0x8   :  { %p1390_p3 = por %p1389_p2, %p1388_p1 }
   0xa   :  { %p1391_p4 = pnand %p1390_p3, %p1384_p0 }
   0xc   :  { %1394 = shalt.err (!%p1391_p4)
}
   0xd   :  { %s1485_s20 = smov 128   ;;  %s1486_s21 = smov 8  }
   0xe   :  { %37 = dma.hbm_to_vmem [thread:$0]  %s1868_s1, 2048, %s32_s16, [#allocation8], %s1485_s20, %s1485_s20, %s1486_s21  }
   0xf   :  { %s1403_s24 = scalar_lea.vmem %s20_s18, 1024  ;;  %p1408_p6 = scmp.lt.s32.totalorder %s20_s18, %s20_s18 }
  0x10   :  { %p1404_p5 = scmp.ne.s32.totalorder %s20_s18, %s1403_s24  ;;  %p1409_p7 = scmp.lt.s32.totalorder %s1403_s24, %s1403_s24 }
  0x12   :  { %p1410_p8 = por %p1409_p7, %p1408_p6 }
  0x14   :  { %p1411_p9 = pnand %p1410_p8, %p1404_p5 }
  0x16   :  { %1414 = shalt.err (!%p1411_p9)
}
  0x17   :  { %25 = dma.hbm_to_vmem [thread:$0]  %s1867_s0, 1024, %s20_s18, [#allocation5], %s1485_s20, %s1485_s20, %s1486_s21  }
  0x18   :  { %s1487_s27 = smov [#allocation9]  }
  0x19   :  { %s43_s28 = sshll.u32 %s1487_s27, 4  ;;  %s44_s28 = int_to_ptr.vmem [resolvable:$true] %s43_s28 }
  0x1a   :  { %s1423_s29 = scalar_lea.vmem %s44_s28, 2048  ;;  %p1428_p11 = scmp.lt.s32.totalorder %s44_s28, %s44_s28 }
  0x1b   :  { %p1424_p10 = scmp.ne.s32.totalorder %s44_s28, %s1423_s29  ;;  %p1429_p12 = scmp.lt.s32.totalorder %s1423_s29, %s1423_s29 }
  0x1d   :  { %p1430_p13 = por %p1429_p12, %p1428_p11 }
  0x1f   :  { %p1431_p0 = pnand %p1430_p13, %p1424_p10 }
  0x21   :  { %1434 = shalt.err (!%p1431_p0)
}
  0x22   :  { %49 = dma.hbm_to_vmem [thread:$0]  %s1869_s2, 2048, %s44_s28, [#allocation8], %s1485_s20, %s1485_s20, %s1486_s21  }
  0x23   :  { %1475 = dma.done.wait [#allocation5], 1024  }
  0x24   :  { %1476 = vsyncadd [#allocation5], 4294966272 }
  0x25   :  { %1477 = dma.done.wait [#allocation8], 4096  }
  0x26   :  { %1478 = vsyncadd [#allocation8], 4294963200  ;;  %v1488_v0 = vmov 0.0   ;;  %vm1489_vm0 = vmmov 0   ;;  %v79_v1 = vld [vmem:[#allocation7 + $0x78] sm:$0xff]  ;;  %v78_v3 = vld [vmem:[#allocation7 + $0x70] sm:$0xff] }
  0x27   :  { %1070 = vmatprep.subr.mxu1 %v1488_v0  ;;  %1102 = vmatprep.mubr.msk.f32.mxu1 %vm1489_vm0, %v1488_v0  ;;  %v1538_v2 = vld [vmem:[#allocation9 + $0x78] sm:$0xff]  ;;  %v1541_v4 = vld [vmem:[#allocation9 + $0x70] sm:$0xff]  ;;  %v77_v5 = vld [vmem:[#allocation7 + $0x68] sm:$0xff]  ;;  %s1490_s0 = smov [#allocation10]  }
  0x28   :  { %1026 = vmatprep.subr.mxu0 %v79_v1  ;;  %1071 = vmatpush3.msra.mxu1 %v1538_v2  ;;  %v1544_v6 = vld [vmem:[#allocation9 + $0x68] sm:$0xff]  ;;  %v76_v7 = vld [vmem:[#allocation7 + $0x60] sm:$0xff]  ;;  %v75_v9 = vld [vmem:[#allocation7 + $0x58] sm:$0xff]  ;;  %s837_s2 = sshll.u32 %s1490_s0, 4  ;;  %s838_s2 = int_to_ptr.vmem [resolvable:$true] %s837_s2 }
  0x29   :  { %1027 = vmatpush3.msra.mxu0 %v79_v1  ;;  %1072 = vmatprep.subr.mxu1 %v1488_v0  ;;  %v1548_v8 = vld [vmem:[#allocation9 + $0x60] sm:$0xff]  ;;  %v1552_v10 = vld [vmem:[#allocation9 + $0x58] sm:$0xff]  ;;  %v74_v11 = vld [vmem:[#allocation7 + $0x50] sm:$0xff]  ;;  %s1435_s5 = scalar_lea.vmem %s838_s2, 1024  ;;  %p1440_p2 = scmp.lt.s32.totalorder %s838_s2, %s838_s2 }
  0x2a   :  { %1028 = vmatprep.subr.mxu0 %v78_v3  ;;  %1073 = vmatpush3.msra.mxu1 %v1541_v4  ;;  %v1556_v12 = vld [vmem:[#allocation9 + $0x50] sm:$0xff]  ;;  %v73_v13 = vld [vmem:[#allocation7 + $0x48] sm:$0xff]  ;;  %v72_v15 = vld [vmem:[#allocation7 + $0x40] sm:$0xff]  ;;  %p1436_p1 = scmp.ne.s32.totalorder %s838_s2, %s1435_s5  ;;  %p1441_p3 = scmp.lt.s32.totalorder %s1435_s5, %s1435_s5 }
  0x2b   :  { %1029 = vmatpush3.msra.mxu0 %v78_v3  ;;  %1074 = vmatprep.subr.mxu1 %v1488_v0  ;;  %v1560_v14 = vld [vmem:[#allocation9 + $0x48] sm:$0xff]  ;;  %v1564_v16 = vld [vmem:[#allocation9 + $0x40] sm:$0xff]  ;;  %v71_v17 = vld [vmem:[#allocation7 + $0x38] sm:$0xff] }
  0x2c   :  { %1030 = vmatprep.subr.mxu0 %v77_v5  ;;  %1075 = vmatpush3.msra.mxu1 %v1544_v6  ;;  %v1568_v18 = vld [vmem:[#allocation9 + $0x38] sm:$0xff]  ;;  %v70_v19 = vld [vmem:[#allocation7 + $0x30] sm:$0xff]  ;;  %v69_v21 = vld [vmem:[#allocation7 + $0x28] sm:$0xff]  ;;  %p1442_p4 = por %p1441_p3, %p1440_p2 }
  0x2d   :  { %1031 = vmatpush3.msra.mxu0 %v77_v5  ;;  %1076 = vmatprep.subr.mxu1 %v1488_v0  ;;  %v1572_v20 = vld [vmem:[#allocation9 + $0x30] sm:$0xff]  ;;  %v1576_v22 = vld [vmem:[#allocation9 + $0x28] sm:$0xff]  ;;  %v68_v23 = vld [vmem:[#allocation7 + $0x20] sm:$0xff] }
  0x2e   :  { %1032 = vmatprep.subr.mxu0 %v76_v7  ;;  %1077 = vmatpush3.msra.mxu1 %v1548_v8  ;;  %v1580_v24 = vld [vmem:[#allocation9 + $0x20] sm:$0xff]  ;;  %v67_v25 = vld [vmem:[#allocation7 + $0x18] sm:$0xff]  ;;  %v66_v27 = vld [vmem:[#allocation7 + $0x10] sm:$0xff]  ;;  %p1443_p5 = pnand %p1442_p4, %p1436_p1 }
  0x2f   :  { %1033 = vmatpush3.msra.mxu0 %v76_v7  ;;  %1078 = vmatprep.subr.mxu1 %v1488_v0  ;;  %v1584_v26 = vld [vmem:[#allocation9 + $0x18] sm:$0xff]  ;;  %v1588_v28 = vld [vmem:[#allocation9 + $0x10] sm:$0xff]  ;;  %v65_v29 = vld [vmem:[#allocation7 + $0x8] sm:$0xff] }
  0x30   :  { %1034 = vmatprep.subr.mxu0 %v75_v9  ;;  %1079 = vmatpush3.msra.mxu1 %v1552_v10  ;;  %v1592_v30 = vld [vmem:[#allocation9 + $0x8] sm:$0xff]  ;;  %v64_v31 = vld [vmem:[#allocation7] sm:$0xff]  ;;  %v98_v35 = vld [vmem:[#allocation4 + $0x10] sm:$0xff] }
  0x31   :  { %1035 = vmatpush3.msra.mxu0 %v75_v9  ;;  %1080 = vmatprep.subr.mxu1 %v1488_v0  ;;  %v96_v32 = vld [vmem:[#allocation4] sm:$0xff]  ;;  %v97_v34 = vld [vmem:[#allocation4 + $0x8] sm:$0xff]  ;;  %v99_v36 = vld [vmem:[#allocation4 + $0x18] sm:$0xff] }
  0x32   :  { %1036 = vmatprep.subr.mxu0 %v74_v11  ;;  %1081 = vmatpush3.msra.mxu1 %v1556_v12  ;;  %v1597_v33 = vld [vmem:[#allocation9] sm:$0xff]  ;;  %v101_v38 = vld [vmem:[#allocation4 + $0x28] sm:$0xff]  ;;  %v102_v39 = vld [vmem:[#allocation4 + $0x30] sm:$0xff] }
  0x33   :  { %1037 = vmatpush3.msra.mxu0 %v74_v11  ;;  %1082 = vmatprep.subr.mxu1 %v1488_v0  ;;  %v100_v37 = vld [vmem:[#allocation4 + $0x20] sm:$0xff]  ;;  %v103_v40 = vld [vmem:[#allocation4 + $0x38] sm:$0xff] }
  0x34   :  { %1038 = vmatprep.subr.mxu0 %v73_v13  ;;  %1083 = vmatpush3.msra.mxu1 %v1560_v14 }
  0x35   :  { %1039 = vmatpush3.msra.mxu0 %v73_v13  ;;  %1084 = vmatprep.subr.mxu1 %v1488_v0 }
  0x36   :  { %1040 = vmatprep.subr.mxu0 %v72_v15  ;;  %1085 = vmatpush3.msra.mxu1 %v1564_v16 }
  0x37   :  { %1041 = vmatpush3.msra.mxu0 %v72_v15  ;;  %1086 = vmatprep.subr.mxu1 %v1488_v0 }
  0x38   :  { %1042 = vmatprep.subr.mxu0 %v71_v17  ;;  %1087 = vmatpush3.msra.mxu1 %v1568_v18 }
  0x39   :  { %1043 = vmatpush3.msra.mxu0 %v71_v17  ;;  %1088 = vmatprep.subr.mxu1 %v1488_v0 }
  0x3a   :  { %1044 = vmatprep.subr.mxu0 %v70_v19  ;;  %1089 = vmatpush3.msra.mxu1 %v1572_v20 }
  0x3b   :  { %1045 = vmatpush3.msra.mxu0 %v70_v19  ;;  %1090 = vmatprep.subr.mxu1 %v1488_v0 }
  0x3c   :  { %1046 = vmatprep.subr.mxu0 %v69_v21  ;;  %1091 = vmatpush3.msra.mxu1 %v1576_v22 }
  0x3d   :  { %1047 = vmatpush3.msra.mxu0 %v69_v21  ;;  %1092 = vmatprep.subr.mxu1 %v1488_v0 }
  0x3e   :  { %1048 = vmatprep.subr.mxu0 %v68_v23  ;;  %1093 = vmatpush3.msra.mxu1 %v1580_v24 }
  0x3f   :  { %1049 = vmatpush3.msra.mxu0 %v68_v23  ;;  %1094 = vmatprep.subr.mxu1 %v1488_v0 }
  0x40   :  { %1050 = vmatprep.subr.mxu0 %v67_v25  ;;  %1095 = vmatpush3.msra.mxu1 %v1584_v26 }
  0x41   :  { %1051 = vmatpush3.msra.mxu0 %v67_v25  ;;  %1096 = vmatprep.subr.mxu1 %v1488_v0 }
  0x42   :  { %1052 = vmatprep.subr.mxu0 %v66_v27  ;;  %1097 = vmatpush3.msra.mxu1 %v1588_v28 }
  0x43   :  { %1053 = vmatpush3.msra.mxu0 %v66_v27  ;;  %1098 = vmatprep.subr.mxu1 %v1488_v0 }
  0x44   :  { %1054 = vmatprep.subr.mxu0 %v65_v29  ;;  %1099 = vmatpush3.msra.mxu1 %v1592_v30 }
  0x45   :  { %1055 = vmatpush3.msra.mxu0 %v65_v29  ;;  %1100 = vmatprep.subr.mxu1 %v1488_v0 }
  0x46   :  { %1056 = vmatprep.subr.mxu0 %v64_v31  ;;  %1058 = vmatprep.mubr.f32.mxu0 %v96_v32 }
  0x47   :  { %1057 = vmatpush3.msra.mxu0 %v64_v31  ;;  %1101 = vmatpush3.msra.mxu1 %v1597_v33 }
  0x48   :  { %1059 = vmatmul.mubr.f32.vlgmr.msra.gmra.mxu0 %v97_v34  ;;  %1103 = vmatmul.mubr.f32.vlgmr.msra.gmra.mxu1 %v1488_v0 }
  0x49   :  { %1105 = vmatprep.subr.mxu0 %v1488_v0  ;;  %1140 = vmatprep.subr.mxu1 %v1488_v0 }
  0x4a   :  { %1106 = vmatpush3.msra.mxu0 %v1538_v2  ;;  %1141 = vmatpush3.msra.mxu1 %v1538_v2 }
  0x4b   :  { %1107 = vmatprep.subr.mxu0 %v1488_v0  ;;  %1142 = vmatprep.subr.mxu1 %v1488_v0 }
  0x4c   :  { %1108 = vmatpush3.msra.mxu0 %v1541_v4  ;;  %1143 = vmatpush3.msra.mxu1 %v1541_v4 }
  0x4d   :  { %1109 = vmatprep.subr.mxu0 %v1488_v0  ;;  %1144 = vmatprep.subr.mxu1 %v1488_v0 }
  0x4e   :  { %1110 = vmatpush3.msra.mxu0 %v1544_v6  ;;  %1145 = vmatpush3.msra.mxu1 %v1544_v6 }
  0x4f   :  { %1111 = vmatprep.subr.mxu0 %v1488_v0  ;;  %1146 = vmatprep.subr.mxu1 %v1488_v0 }
  0x50   :  { %1112 = vmatpush3.msra.mxu0 %v1548_v8  ;;  %1147 = vmatpush3.msra.mxu1 %v1548_v8 }
  0x51   :  { %1113 = vmatprep.subr.mxu0 %v1488_v0  ;;  %1148 = vmatprep.subr.mxu1 %v1488_v0 }
  0x52   :  { %1114 = vmatpush3.msra.mxu0 %v1552_v10  ;;  %1149 = vmatpush3.msra.mxu1 %v1552_v10 }
  0x53   :  { %1115 = vmatprep.subr.mxu0 %v1488_v0  ;;  %1150 = vmatprep.subr.mxu1 %v1488_v0 }
  0x54   :  { %1116 = vmatpush3.msra.mxu0 %v1556_v12  ;;  %1151 = vmatpush3.msra.mxu1 %v1556_v12 }
  0x55   :  { %1117 = vmatprep.subr.mxu0 %v1488_v0  ;;  %1152 = vmatprep.subr.mxu1 %v1488_v0 }
  0x56   :  { %1118 = vmatpush3.msra.mxu0 %v1560_v14  ;;  %1153 = vmatpush3.msra.mxu1 %v1560_v14 }
  0x57   :  { %1119 = vmatprep.subr.mxu0 %v1488_v0  ;;  %1154 = vmatprep.subr.mxu1 %v1488_v0 }
  0x58   :  { %1120 = vmatpush3.msra.mxu0 %v1564_v16  ;;  %1155 = vmatpush3.msra.mxu1 %v1564_v16 }
  0x59   :  { %1121 = vmatprep.subr.mxu0 %v1488_v0  ;;  %1156 = vmatprep.subr.mxu1 %v1488_v0 }
  0x5a   :  { %1122 = vmatpush3.msra.mxu0 %v1568_v18  ;;  %1157 = vmatpush3.msra.mxu1 %v1568_v18 }
  0x5b   :  { %1123 = vmatprep.subr.mxu0 %v1488_v0  ;;  %1158 = vmatprep.subr.mxu1 %v1488_v0 }
  0x5c   :  { %1124 = vmatpush3.msra.mxu0 %v1572_v20  ;;  %1159 = vmatpush3.msra.mxu1 %v1572_v20 }
  0x5d   :  { %1125 = vmatprep.subr.mxu0 %v1488_v0  ;;  %1160 = vmatprep.subr.mxu1 %v1488_v0 }
  0x5e   :  { %1126 = vmatpush3.msra.mxu0 %v1576_v22  ;;  %1161 = vmatpush3.msra.mxu1 %v1576_v22 }
  0x5f   :  { %1127 = vmatprep.subr.mxu0 %v1488_v0  ;;  %1162 = vmatprep.subr.mxu1 %v1488_v0 }
  0x60   :  { %1128 = vmatpush3.msra.mxu0 %v1580_v24  ;;  %1163 = vmatpush3.msra.mxu1 %v1580_v24 }
  0x61   :  { %1129 = vmatprep.subr.mxu0 %v1488_v0  ;;  %1164 = vmatprep.subr.mxu1 %v1488_v0 }
  0x62   :  { %1130 = vmatpush3.msra.mxu0 %v1584_v26  ;;  %1165 = vmatpush3.msra.mxu1 %v1584_v26 }
  0x63   :  { %1131 = vmatprep.subr.mxu0 %v1488_v0  ;;  %1166 = vmatprep.subr.mxu1 %v1488_v0 }
  0x64   :  { %1132 = vmatpush3.msra.mxu0 %v1588_v28  ;;  %1167 = vmatpush3.msra.mxu1 %v1588_v28 }
  0x65   :  { %1133 = vmatprep.subr.mxu0 %v1488_v0  ;;  %1168 = vmatprep.subr.mxu1 %v1488_v0 }
  0x66   :  { %1134 = vmatpush3.msra.mxu0 %v1592_v30  ;;  %1169 = vmatpush3.msra.mxu1 %v1592_v30 }
  0x67   :  { %1135 = vmatprep.subr.mxu0 %v1488_v0  ;;  %1170 = vmatprep.subr.mxu1 %v1488_v0 }
  0x68   :  { %1136 = vmatpush3.msra.mxu0 %v1597_v33  ;;  %1171 = vmatpush3.msra.mxu1 %v1597_v33 }
  0x69   :  { %1172 = vmatprep.mubr.msk.f32.mxu1 %vm1489_vm0, %v1488_v0  ;;  %1175 = vmatprep.subr.mxu0 %v1488_v0 }
  0x6a   :  { %1210 = vmatprep.subr.mxu1 %v1488_v0  ;;  %1061 = vmatprep.mubr.f32.mxu0 %v98_v35 }
  0x6b   :  { %1062 = vmatmul.mubr.f32.gmra.mxu0 %v99_v36 }
  0x6c   :  { %1064 = vmatprep.mubr.f32.mxu0 %v100_v37 }
  0x6f   :  { %1065 = vmatmul.mubr.f32.gmra.mxu0 %v101_v38 }
  0x70   :  { %1067 = vmatprep.mubr.f32.mxu0 %v102_v39 }
  0x73   :  { %1068 = vmatmul.mubr.f32.gmra.mxu0 %v103_v40 }
  0x74   :  { %1137 = vmatprep.mubr.msk.f32.mxu0 %vm1489_vm0, %v1488_v0 }
 0x108   :  { %v1060_v41 = vpop.f32.mrf.mxu0  ;;  %v285_v42 = vpop.f32.mrf.mxu1 }
 0x10a   :  { %v170_v43 = vpop.f32.mrf.mxu0  ;;  %v1104_v44 = vpop.f32.mrf.mxu1 }
 0x10b   :  { %v286_v45 = vadd.f32 %v285_v42, %v170_v43 }
 0x10d   :  { %1359 = vtanh.f32 %v286_v45  ;;  %290 = vst [vmem:[#allocation10] sm:$0xff] %v286_v45 }
 0x11a   :  { %v1360_v46 = vpop.eup %1359 }
 0x11b   :  { %291 = vst [vmem:[#allocation11] sm:$0xff] %v1360_v46  ;;  %1138 = vmatmul.mubr.f32.vlgmr.msra.gmra.mxu0 %v1360_v46 }
 0x11c   :  { %1176 = vmatpush3.msra.mxu0 %v1538_v2  ;;  %1207 = vmatprep.mubr.msk.f32.mxu0 %vm1489_vm0, %v1488_v0 }
 0x11d   :  { %1177 = vmatprep.subr.mxu0 %v1488_v0 }
 0x11e   :  { %1178 = vmatpush3.msra.mxu0 %v1541_v4 }
 0x11f   :  { %1179 = vmatprep.subr.mxu0 %v1488_v0 }
 0x120   :  { %1180 = vmatpush3.msra.mxu0 %v1544_v6 }
 0x121   :  { %1181 = vmatprep.subr.mxu0 %v1488_v0 }
 0x122   :  { %1182 = vmatpush3.msra.mxu0 %v1548_v8 }
 0x123   :  { %1183 = vmatprep.subr.mxu0 %v1488_v0 }
 0x124   :  { %1184 = vmatpush3.msra.mxu0 %v1552_v10 }
 0x125   :  { %1185 = vmatprep.subr.mxu0 %v1488_v0 }
 0x126   :  { %1186 = vmatpush3.msra.mxu0 %v1556_v12 }
 0x127   :  { %1187 = vmatprep.subr.mxu0 %v1488_v0 }
 0x128   :  { %1188 = vmatpush3.msra.mxu0 %v1560_v14 }
 0x129   :  { %1189 = vmatprep.subr.mxu0 %v1488_v0 }
 0x12a   :  { %1190 = vmatpush3.msra.mxu0 %v1564_v16 }
 0x12b   :  { %1191 = vmatprep.subr.mxu0 %v1488_v0  ;;  %v1706_v47 = vpop.f32.mrf.mxu0 }
 0x12c   :  { %1192 = vmatpush3.msra.mxu0 %v1568_v18 }
 0x12d   :  { %1193 = vmatprep.subr.mxu0 %v1488_v0  ;;  %v180_v48 = vpop.f32.mrf.mxu0 }
 0x12e   :  { %1194 = vmatpush3.msra.mxu0 %v1572_v20 }
 0x12f   :  { %1195 = vmatprep.subr.mxu0 %v1488_v0  ;;  %v1708_v49 = vpop.f32.mrf.mxu0 }
 0x130   :  { %1196 = vmatpush3.msra.mxu0 %v1576_v22 }
 0x131   :  { %1197 = vmatprep.subr.mxu0 %v1488_v0  ;;  %v1710_v50 = vpop.f32.mrf.mxu0 }
 0x132   :  { %1198 = vmatpush3.msra.mxu0 %v1580_v24 }
 0x133   :  { %1199 = vmatprep.subr.mxu0 %v1488_v0  ;;  %v1712_v51 = vpop.f32.mrf.mxu0 }
 0x134   :  { %1200 = vmatpush3.msra.mxu0 %v1584_v26 }
 0x135   :  { %1201 = vmatprep.subr.mxu0 %v1488_v0  ;;  %v1714_v52 = vpop.f32.mrf.mxu0 }
 0x136   :  { %1202 = vmatpush3.msra.mxu0 %v1588_v28 }
 0x137   :  { %1203 = vmatprep.subr.mxu0 %v1488_v0 }
 0x138   :  { %1204 = vmatpush3.msra.mxu0 %v1592_v30 }
 0x139   :  { %1205 = vmatprep.subr.mxu0 %v1488_v0 }
 0x13a   :  { %1206 = vmatpush3.msra.mxu0 %v1597_v33 }
 0x13b   :  { %1245 = vmatprep.subr.mxu0 %v1488_v0 }
 0x1db   :  { %v360_v53 = vpop.f32.mrf.mxu0 }
 0x1dc   :  { %v361_v54 = vadd.f32 %v1060_v41, %v360_v53 }
 0x1dd   :  { %v1139_v55 = vpop.f32.mrf.mxu0 }
 0x1de   :  { %1361 = vtanh.f32 %v361_v54  ;;  %366 = vst [vmem:[#allocation10 + $0x8] sm:$0xff] %v361_v54 }
 0x1eb   :  { %v1362_v56 = vpop.eup %1361 }
 0x1ec   :  { %368 = vst [vmem:[#allocation11 + $0x8] sm:$0xff] %v1362_v56  ;;  %1173 = vmatmul.mubr.f32.vlgmr.msra.gmra.mxu1 %v1362_v56 }
 0x1ed   :  { %1211 = vmatpush3.msra.mxu1 %v1538_v2  ;;  %1242 = vmatprep.mubr.msk.f32.mxu1 %vm1489_vm0, %v1488_v0 }
 0x1ee   :  { %1212 = vmatprep.subr.mxu1 %v1488_v0 }
 0x1ef   :  { %1213 = vmatpush3.msra.mxu1 %v1541_v4 }
 0x1f0   :  { %1214 = vmatprep.subr.mxu1 %v1488_v0 }
 0x1f1   :  { %1215 = vmatpush3.msra.mxu1 %v1544_v6 }
 0x1f2   :  { %1216 = vmatprep.subr.mxu1 %v1488_v0 }
 0x1f3   :  { %1217 = vmatpush3.msra.mxu1 %v1548_v8 }
 0x1f4   :  { %1218 = vmatprep.subr.mxu1 %v1488_v0 }
 0x1f5   :  { %1219 = vmatpush3.msra.mxu1 %v1552_v10 }
 0x1f6   :  { %1220 = vmatprep.subr.mxu1 %v1488_v0 }
 0x1f7   :  { %1221 = vmatpush3.msra.mxu1 %v1556_v12 }
 0x1f8   :  { %1222 = vmatprep.subr.mxu1 %v1488_v0 }
 0x1f9   :  { %1223 = vmatpush3.msra.mxu1 %v1560_v14 }
 0x1fa   :  { %1224 = vmatprep.subr.mxu1 %v1488_v0 }
 0x1fb   :  { %1225 = vmatpush3.msra.mxu1 %v1564_v16 }
 0x1fc   :  { %1226 = vmatprep.subr.mxu1 %v1488_v0 }
 0x1fd   :  { %1227 = vmatpush3.msra.mxu1 %v1568_v18 }
 0x1fe   :  { %1228 = vmatprep.subr.mxu1 %v1488_v0 }
 0x1ff   :  { %1229 = vmatpush3.msra.mxu1 %v1572_v20 }
 0x200   :  { %1230 = vmatprep.subr.mxu1 %v1488_v0 }
 0x201   :  { %1231 = vmatpush3.msra.mxu1 %v1576_v22 }
 0x202   :  { %1232 = vmatprep.subr.mxu1 %v1488_v0 }
 0x203   :  { %1233 = vmatpush3.msra.mxu1 %v1580_v24 }
 0x204   :  { %1234 = vmatprep.subr.mxu1 %v1488_v0 }
 0x205   :  { %1235 = vmatpush3.msra.mxu1 %v1584_v26 }
 0x206   :  { %1236 = vmatprep.subr.mxu1 %v1488_v0 }
 0x207   :  { %1237 = vmatpush3.msra.mxu1 %v1588_v28 }
 0x208   :  { %1238 = vmatprep.subr.mxu1 %v1488_v0 }
 0x209   :  { %1239 = vmatpush3.msra.mxu1 %v1592_v30 }
 0x20a   :  { %1240 = vmatprep.subr.mxu1 %v1488_v0 }
 0x20b   :  { %1241 = vmatpush3.msra.mxu1 %v1597_v33 }
 0x20c   :  { %1280 = vmatprep.subr.mxu1 %v1488_v0 }
 0x2ac   :  { %v437_v57 = vpop.f32.mrf.mxu1 }
 0x2ad   :  { %v438_v58 = vadd.f32 %v437_v57, %v180_v48 }
 0x2ae   :  { %v1174_v59 = vpop.f32.mrf.mxu1 }
 0x2af   :  { %1363 = vtanh.f32 %v438_v58  ;;  %443 = vst [vmem:[#allocation10 + $0x10] sm:$0xff] %v438_v58 }
 0x2bc   :  { %v1364_v60 = vpop.eup %1363 }
 0x2bd   :  { %445 = vst [vmem:[#allocation11 + $0x10] sm:$0xff] %v1364_v60  ;;  %1208 = vmatmul.mubr.f32.vlgmr.msra.gmra.mxu0 %v1364_v60 }
 0x2be   :  { %1246 = vmatpush3.msra.mxu0 %v1538_v2  ;;  %1277 = vmatprep.mubr.msk.f32.mxu0 %vm1489_vm0, %v1488_v0 }
 0x2bf   :  { %1247 = vmatprep.subr.mxu0 %v1488_v0 }
 0x2c0   :  { %1248 = vmatpush3.msra.mxu0 %v1541_v4 }
 0x2c1   :  { %1249 = vmatprep.subr.mxu0 %v1488_v0 }
 0x2c2   :  { %1250 = vmatpush3.msra.mxu0 %v1544_v6 }
 0x2c3   :  { %1251 = vmatprep.subr.mxu0 %v1488_v0 }
 0x2c4   :  { %1252 = vmatpush3.msra.mxu0 %v1548_v8 }
 0x2c5   :  { %1253 = vmatprep.subr.mxu0 %v1488_v0 }
 0x2c6   :  { %1254 = vmatpush3.msra.mxu0 %v1552_v10 }
 0x2c7   :  { %1255 = vmatprep.subr.mxu0 %v1488_v0 }
 0x2c8   :  { %1256 = vmatpush3.msra.mxu0 %v1556_v12 }
 0x2c9   :  { %1257 = vmatprep.subr.mxu0 %v1488_v0 }
 0x2ca   :  { %1258 = vmatpush3.msra.mxu0 %v1560_v14 }
 0x2cb   :  { %1259 = vmatprep.subr.mxu0 %v1488_v0 }
 0x2cc   :  { %1260 = vmatpush3.msra.mxu0 %v1564_v16 }
 0x2cd   :  { %1261 = vmatprep.subr.mxu0 %v1488_v0 }
 0x2ce   :  { %1262 = vmatpush3.msra.mxu0 %v1568_v18 }
 0x2cf   :  { %1263 = vmatprep.subr.mxu0 %v1488_v0 }
 0x2d0   :  { %1264 = vmatpush3.msra.mxu0 %v1572_v20 }
 0x2d1   :  { %1265 = vmatprep.subr.mxu0 %v1488_v0 }
 0x2d2   :  { %1266 = vmatpush3.msra.mxu0 %v1576_v22 }
 0x2d3   :  { %1267 = vmatprep.subr.mxu0 %v1488_v0 }
 0x2d4   :  { %1268 = vmatpush3.msra.mxu0 %v1580_v24 }
 0x2d5   :  { %1269 = vmatprep.subr.mxu0 %v1488_v0 }
 0x2d6   :  { %1270 = vmatpush3.msra.mxu0 %v1584_v26 }
 0x2d7   :  { %1271 = vmatprep.subr.mxu0 %v1488_v0 }
 0x2d8   :  { %1272 = vmatpush3.msra.mxu0 %v1588_v28 }
 0x2d9   :  { %1273 = vmatprep.subr.mxu0 %v1488_v0 }
 0x2da   :  { %1274 = vmatpush3.msra.mxu0 %v1592_v30 }
 0x2db   :  { %1275 = vmatprep.subr.mxu0 %v1488_v0 }
 0x2dc   :  { %1276 = vmatpush3.msra.mxu0 %v1597_v33 }
 0x2dd   :  { %1315 = vmatprep.subr.mxu0 %v1488_v0 }
 0x37d   :  { %v514_v61 = vpop.f32.mrf.mxu0 }
 0x37e   :  { %v515_v62 = vadd.f32 %v1706_v47, %v514_v61 }
 0x37f   :  { %v1209_v63 = vpop.f32.mrf.mxu0 }
 0x380   :  { %1365 = vtanh.f32 %v515_v62  ;;  %520 = vst [vmem:[#allocation10 + $0x18] sm:$0xff] %v515_v62 }
 0x38d   :  { %v1366_v1 = vpop.eup %1365 }
 0x38e   :  { %522 = vst [vmem:[#allocation11 + $0x18] sm:$0xff] %v1366_v1  ;;  %1243 = vmatmul.mubr.f32.vlgmr.msra.gmra.mxu1 %v1366_v1 }
 0x38f   :  { %1281 = vmatpush3.msra.mxu1 %v1538_v2  ;;  %1312 = vmatprep.mubr.msk.f32.mxu1 %vm1489_vm0, %v1488_v0 }
 0x390   :  { %1282 = vmatprep.subr.mxu1 %v1488_v0 }
 0x391   :  { %1283 = vmatpush3.msra.mxu1 %v1541_v4 }
 0x392   :  { %1284 = vmatprep.subr.mxu1 %v1488_v0 }
 0x393   :  { %1285 = vmatpush3.msra.mxu1 %v1544_v6 }
 0x394   :  { %1286 = vmatprep.subr.mxu1 %v1488_v0 }
 0x395   :  { %1287 = vmatpush3.msra.mxu1 %v1548_v8 }
 0x396   :  { %1288 = vmatprep.subr.mxu1 %v1488_v0 }
 0x397   :  { %1289 = vmatpush3.msra.mxu1 %v1552_v10 }
 0x398   :  { %1290 = vmatprep.subr.mxu1 %v1488_v0 }
 0x399   :  { %1291 = vmatpush3.msra.mxu1 %v1556_v12 }
 0x39a   :  { %1292 = vmatprep.subr.mxu1 %v1488_v0 }
 0x39b   :  { %1293 = vmatpush3.msra.mxu1 %v1560_v14 }
 0x39c   :  { %1294 = vmatprep.subr.mxu1 %v1488_v0 }
 0x39d   :  { %1295 = vmatpush3.msra.mxu1 %v1564_v16 }
 0x39e   :  { %1296 = vmatprep.subr.mxu1 %v1488_v0 }
 0x39f   :  { %1297 = vmatpush3.msra.mxu1 %v1568_v18 }
 0x3a0   :  { %1298 = vmatprep.subr.mxu1 %v1488_v0 }
 0x3a1   :  { %1299 = vmatpush3.msra.mxu1 %v1572_v20 }
 0x3a2   :  { %1300 = vmatprep.subr.mxu1 %v1488_v0 }
 0x3a3   :  { %1301 = vmatpush3.msra.mxu1 %v1576_v22 }
 0x3a4   :  { %1302 = vmatprep.subr.mxu1 %v1488_v0 }
 0x3a5   :  { %1303 = vmatpush3.msra.mxu1 %v1580_v24 }
 0x3a6   :  { %1304 = vmatprep.subr.mxu1 %v1488_v0 }
 0x3a7   :  { %1305 = vmatpush3.msra.mxu1 %v1584_v26 }
 0x3a8   :  { %1306 = vmatprep.subr.mxu1 %v1488_v0 }
 0x3a9   :  { %1307 = vmatpush3.msra.mxu1 %v1588_v28 }
 0x3aa   :  { %1308 = vmatprep.subr.mxu1 %v1488_v0 }
 0x3ab   :  { %1309 = vmatpush3.msra.mxu1 %v1592_v30 }
 0x3ac   :  { %1310 = vmatprep.subr.mxu1 %v1488_v0 }
 0x3ad   :  { %1311 = vmatpush3.msra.mxu1 %v1597_v33 }
 0x44e   :  { %v591_v3 = vpop.f32.mrf.mxu1 }
 0x44f   :  { %v592_v5 = vadd.f32 %v591_v3, %v1710_v50 }
 0x450   :  { %v1244_v7 = vpop.f32.mrf.mxu1 }
 0x451   :  { %1367 = vtanh.f32 %v592_v5  ;;  %597 = vst [vmem:[#allocation10 + $0x20] sm:$0xff] %v592_v5 }
 0x45e   :  { %v1368_v9 = vpop.eup %1367 }
 0x45f   :  { %599 = vst [vmem:[#allocation11 + $0x20] sm:$0xff] %v1368_v9  ;;  %1278 = vmatmul.mubr.f32.vlgmr.msra.gmra.mxu0 %v1368_v9 }
 0x460   :  { %1316 = vmatpush3.msra.mxu0 %v1538_v2  ;;  %1347 = vmatprep.mubr.msk.f32.mxu0 %vm1489_vm0, %v1488_v0 }
 0x461   :  { %1317 = vmatprep.subr.mxu0 %v1488_v0 }
 0x462   :  { %1318 = vmatpush3.msra.mxu0 %v1541_v4 }
 0x463   :  { %1319 = vmatprep.subr.mxu0 %v1488_v0 }
 0x464   :  { %1320 = vmatpush3.msra.mxu0 %v1544_v6 }
 0x465   :  { %1321 = vmatprep.subr.mxu0 %v1488_v0 }
 0x466   :  { %1322 = vmatpush3.msra.mxu0 %v1548_v8 }
 0x467   :  { %1323 = vmatprep.subr.mxu0 %v1488_v0 }
 0x468   :  { %1324 = vmatpush3.msra.mxu0 %v1552_v10 }
 0x469   :  { %1325 = vmatprep.subr.mxu0 %v1488_v0 }
 0x46a   :  { %1326 = vmatpush3.msra.mxu0 %v1556_v12 }
 0x46b   :  { %1327 = vmatprep.subr.mxu0 %v1488_v0 }
 0x46c   :  { %1328 = vmatpush3.msra.mxu0 %v1560_v14 }
 0x46d   :  { %1329 = vmatprep.subr.mxu0 %v1488_v0 }
 0x46e   :  { %1330 = vmatpush3.msra.mxu0 %v1564_v16 }
 0x46f   :  { %1331 = vmatprep.subr.mxu0 %v1488_v0 }
 0x470   :  { %1332 = vmatpush3.msra.mxu0 %v1568_v18 }
 0x471   :  { %1333 = vmatprep.subr.mxu0 %v1488_v0 }
 0x472   :  { %1334 = vmatpush3.msra.mxu0 %v1572_v20 }
 0x473   :  { %1335 = vmatprep.subr.mxu0 %v1488_v0 }
 0x474   :  { %1336 = vmatpush3.msra.mxu0 %v1576_v22 }
 0x475   :  { %1337 = vmatprep.subr.mxu0 %v1488_v0 }
 0x476   :  { %1338 = vmatpush3.msra.mxu0 %v1580_v24 }
 0x477   :  { %1339 = vmatprep.subr.mxu0 %v1488_v0 }
 0x478   :  { %1340 = vmatpush3.msra.mxu0 %v1584_v26 }
 0x479   :  { %1341 = vmatprep.subr.mxu0 %v1488_v0 }
 0x47a   :  { %1342 = vmatpush3.msra.mxu0 %v1588_v28 }
 0x47b   :  { %1343 = vmatprep.subr.mxu0 %v1488_v0 }
 0x47c   :  { %1344 = vmatpush3.msra.mxu0 %v1592_v30 }
 0x47d   :  { %1345 = vmatprep.subr.mxu0 %v1488_v0 }
 0x47e   :  { %1346 = vmatpush3.msra.mxu0 %v1597_v33 }
 0x51f   :  { %v668_v2 = vpop.f32.mrf.mxu0 }
 0x520   :  { %v669_v4 = vadd.f32 %v1708_v49, %v668_v2 }
 0x521   :  { %v1279_v6 = vpop.f32.mrf.mxu0 }
 0x522   :  { %1369 = vtanh.f32 %v669_v4  ;;  %674 = vst [vmem:[#allocation10 + $0x28] sm:$0xff] %v669_v4 }
 0x52f   :  { %v1370_v8 = vpop.eup %1369 }
 0x530   :  { %676 = vst [vmem:[#allocation11 + $0x28] sm:$0xff] %v1370_v8  ;;  %1313 = vmatmul.mubr.f32.vlgmr.msra.gmra.mxu1 %v1370_v8 }
 0x5f0   :  { %v745_v10 = vpop.f32.mrf.mxu1 }
 0x5f1   :  { %v746_v11 = vadd.f32 %v745_v10, %v1714_v52 }
 0x5f2   :  { %v1314_v12 = vpop.f32.mrf.mxu1 }
 0x5f3   :  { %1371 = vtanh.f32 %v746_v11  ;;  %751 = vst [vmem:[#allocation10 + $0x30] sm:$0xff] %v746_v11 }
 0x600   :  { %v1372_v13 = vpop.eup %1371 }
 0x601   :  { %753 = vst [vmem:[#allocation11 + $0x30] sm:$0xff] %v1372_v13  ;;  %1348 = vmatmul.mubr.f32.vlgmr.msra.gmra.mxu0 %v1372_v13 }
 0x6c1   :  { %v822_v0 = vpop.f32.mrf.mxu0 }
 0x6c2   :  { %v823_v14 = vadd.f32 %v1712_v51, %v822_v0 }
 0x6c3   :  { %v1349_v15 = vpop.f32.mrf.mxu0 }
 0x6c4   :  { %1373 = vtanh.f32 %v823_v14  ;;  %828 = vst [vmem:[#allocation10 + $0x38] sm:$0xff] %v823_v14 }
 0x6c5   :  { %1446 = shalt.err (!%p1443_p5)
}
 0x6c6   :  { %843 = dma.vmem_to_hbm [thread:$0]  %s838_s2, 1024, %s1870_s3, [#allocation6], %s1485_s20, %s1485_s20, %s1486_s21  }
 0x6c7   :  { %s1491_s8 = smov [#allocation11]  }
 0x6c8   :  { %s849_s9 = sshll.u32 %s1491_s8, 4  ;;  %s850_s9 = int_to_ptr.vmem [resolvable:$true] %s849_s9 }
 0x6c9   :  { %s1455_s10 = scalar_lea.vmem %s850_s9, 1024  ;;  %p1460_p7 = scmp.lt.s32.totalorder %s850_s9, %s850_s9 }
 0x6ca   :  { %p1456_p6 = scmp.ne.s32.totalorder %s850_s9, %s1455_s10  ;;  %p1461_p8 = scmp.lt.s32.totalorder %s1455_s10, %s1455_s10 }
 0x6cc   :  { %p1462_p9 = por %p1461_p8, %p1460_p7 }
 0x6ce   :  { %p1463_p10 = pnand %p1462_p9, %p1456_p6 }
 0x6d1   :  { %v1374_v16 = vpop.eup %1373 }
 0x6d2   :  { %830 = vst [vmem:[#allocation11 + $0x38] sm:$0xff] %v1374_v16 }
 0x6d3   :  { %1466 = shalt.err (!%p1463_p10)
}
 0x6d4   :  { %855 = dma.vmem_to_hbm [thread:$0]  %s850_s9, 1024, %s1871_s4, [#allocation12], %s1485_s20, %s1485_s20, %s1486_s21  }
 0x6d5   :  { %1479 = dma.done.wait [#allocation6], 1024  }
 0x6d6   :  { %1480 = vsyncadd [#allocation6], 4294966272 }
 0x6d7   :  { %1481 = dma.done.wait [#allocation12], 1024  }
 0x6d8   :  { %1482 = vsyncadd [#allocation12], 4294966272 }
 0x6d9   :  { %862 = vsyncpa [#allocation5], 1 }
 0x6da   :  { %863 = vsyncpa [#allocation8], 1 }
 0x6db   :  { %864 = vsyncpa [#allocation6], 1 }
 0x6dc   :  { %865 = vsyncpa [#allocation12], 1 }

</bundles_post_ra>
